<compile_context>
chip_gen: v7x
topology: tpu7x:2x2x1
jax: 0.10.0
libtpu: 0.0.40
codegen_flags: <defaults>
</compile_context>

<pallas_src>
import functools

import jax
import jax.numpy as jnp
from jax import lax
from jax.experimental import pallas as pl
from jax.experimental.pallas import tpu as pltpu


def _sepconv_kernel(x_ref, rc_ref, dw_ref, pw_ref, pwb_ref, o_ref,
                    *, kernel_size, padding, h, w):
    # x_ref  : (1, Cin, H*W)    channel-major, spatially-flattened input tile
    # rc_ref : (2, H*W) int32   row / col index of each flat output position
    # dw_ref : (Cin, k*k)       depthwise tap weights (per-channel)
    # pw_ref : (Cout, Cin)      pointwise (1x1 conv) weights
    # pwb_ref: (Cout, 1) f32    folded bias (pw @ dwb + pwb)
    # o_ref  : (1, Cout, H*W)   channel-major, spatially-flattened output
    hw = h * w
    cin = x_ref.shape[1]

    x = x_ref[0].astype(jnp.float32)           # (Cin, H*W), lane-dense
    dwt = dw_ref[...].astype(jnp.float32)      # (Cin, k*k)

    # Edge-mask index vectors; broadcasts hoisted out of the tap loop so every
    # compare / select below is same-shaped.
    row = jnp.broadcast_to(rc_ref[0:1, :], (cin, hw))
    col = jnp.broadcast_to(rc_ref[1:2, :], (cin, hw))

    acc = None
    for kh in range(kernel_size):
        for kw in range(kernel_size):
            dh = kh - padding
            dcol = kw - padding
            off = dh * w + dcol
            # out[:, o] needs in[:, o + off] (flat row-major index).  A circular
            # roll plus the edge masks below reproduces zero padding exactly.
            win = x if off == 0 else pltpu.roll(x, shift=(-off) % hw, axis=1)

            mask = None
            if dh > 0:
                mask = row < (h - dh)
            elif dh < 0:
                mask = row >= (-dh)
            if dcol > 0:
                c = col < (w - dcol)
                mask = c if mask is None else jnp.logical_and(mask, c)
            elif dcol < 0:
                c = col >= (-dcol)
                mask = c if mask is None else jnp.logical_and(mask, c)
            if mask is not None:
                win = jnp.where(mask, win, 0.0)

            t = kh * kernel_size + kw
            term = win * dwt[:, t:t + 1]       # per-channel weight, lane broadcast
            acc = term if acc is None else acc + term

    # Pointwise 1x1 conv on the MXU: (Cout, Cin) . (Cin, HW) -> (Cout, HW).
    y = lax.dot_general(pw_ref[...].astype(jnp.float32), acc,
                        dimension_numbers=(((1,), (0,)), ((), ())),
                        preferred_element_type=jnp.float32)
    y = y + pwb_ref[...]                        # folded (Cout, 1) bias, lane broadcast
    o_ref[...] = y[None].astype(o_ref.dtype)    # lane-dense (Cout, 256) store


def separable_conv2d(x_nchw, dw_weight, dw_bias, pw_weight, pw_bias,
                     *, kernel_size, padding, stride):
    """x_nchw: (N, Cin, H, W). dw_weight: (Cin, 1, k, k). pw_weight: (Cout, Cin, 1, 1)."""
    n, cin, h, w = x_nchw.shape
    cout = pw_weight.shape[0]
    hw = h * w

    if kernel_size != 2 * padding + 1:
        # TODO(synk): general (kernel_size, padding) combos need a different
        # shift/mask scheme; SwiftSRGAN only uses 'same' depthwise convs.
        raise NotImplementedError("fused kernel assumes k == 2*padding+1 ('same' conv)")

    # All wrapper prep is free (contiguous reshapes) or tiny scalar math:
    x_flat = x_nchw.reshape(n, cin, hw)                            # NCHW view, no copy
    dw_flat = dw_weight.reshape(cin, kernel_size * kernel_size)    # (Cin, k*k)
    pw_oc = pw_weight.reshape(cout, cin)                           # (Cout, Cin)
    # Fold depthwise bias into the pointwise bias (exact: no activation between).
    pwb_eff = (pw_oc.astype(jnp.float32) @ dw_bias.astype(jnp.float32)
               + pw_bias.astype(jnp.float32)).reshape(cout, 1).astype(jnp.float32)
    # Precomputed row/col of each flat output position (avoids in-kernel div/mod).
    pos = jnp.arange(hw, dtype=jnp.int32)
    rc = jnp.stack([pos // w, pos % w]).astype(jnp.int32)          # (2, H*W)

    kernel = functools.partial(_sepconv_kernel, kernel_size=kernel_size,
                               padding=padding, h=h, w=w)

    out_flat = pl.pallas_call(
        kernel,
        out_shape=jax.ShapeDtypeStruct((n, cout, hw), x_nchw.dtype),
        grid_spec=pltpu.PrefetchScalarGridSpec(
            num_scalar_prefetch=0,
            grid=(n,),
            in_specs=[
                pl.BlockSpec((1, cin, hw), lambda b: (b, 0, 0)),
                pl.BlockSpec((2, hw), lambda b: (0, 0)),
                pl.BlockSpec((cin, kernel_size * kernel_size), lambda b: (0, 0)),
                pl.BlockSpec((cout, cin), lambda b: (0, 0)),
                pl.BlockSpec((cout, 1), lambda b: (0, 0)),
            ],
            out_specs=pl.BlockSpec((1, cout, hw), lambda b: (b, 0, 0)),
        ),
        compiler_params=pltpu.CompilerParams(
            dimension_semantics=("parallel",)),
    )(x_flat, rc, dw_flat, pw_oc, pwb_eff)

    # (N, Cout, H*W) -> (N, Cout, H, W): contiguous reshape (free).
    out = out_flat.reshape(n, cout, h, w)
    if stride > 1:
        # The 1x1 pointwise conv commutes with spatial decimation, so the strided
        # depthwise conv equals decimating the stride-1 result (cheap strided slice).
        out = out[:, :, ::stride, ::stride]
    return out


def _reference(x_nchw, dw_weight, dw_bias, pw_weight, pw_bias,
               *, kernel_size, padding, stride):
    cin = x_nchw.shape[1]
    y = lax.conv_general_dilated(
        x_nchw, dw_weight,
        window_strides=(stride, stride),
        padding=((padding, padding), (padding, padding)),
        dimension_numbers=("NCHW", "OIHW", "NCHW"),
        feature_group_count=cin,
    ) + dw_bias[None, :, None, None]
    z = lax.conv_general_dilated(
        y, pw_weight,
        window_strides=(1, 1),
        padding=((0, 0), (0, 0)),
        dimension_numbers=("NCHW", "OIHW", "NCHW"),
    ) + pw_bias[None, :, None, None]
    return z


if __name__ == "__main__":
    # SeparableConv2d(in_channels=4, out_channels=8, kernel_size=3, padding=1,
    #                 stride=1, bias=True)
    N, CIN, COUT, H, W = 2, 4, 8, 16, 16
    K, PAD = 3, 1

    key = jax.random.PRNGKey(0)
    k_x, k_dw, k_dwb, k_pw, k_pwb = jax.random.split(key, 5)

    x = jax.random.normal(k_x, (N, CIN, H, W), dtype=jnp.float32)
    dw_weight = jax.random.normal(k_dw, (CIN, 1, K, K), dtype=jnp.float32) * 0.1
    dw_bias = jax.random.normal(k_dwb, (CIN,), dtype=jnp.float32) * 0.1
    pw_weight = jax.random.normal(k_pw, (COUT, CIN, 1, 1), dtype=jnp.float32) * 0.1
    pw_bias = jax.random.normal(k_pwb, (COUT,), dtype=jnp.float32) * 0.1

    # stride = 1 (SwiftSRGAN generator config)
    out = separable_conv2d(x, dw_weight, dw_bias, pw_weight, pw_bias,
                           kernel_size=K, padding=PAD, stride=1)
    out = jax.block_until_ready(out)
    ref = _reference(x, dw_weight, dw_bias, pw_weight, pw_bias,
                     kernel_size=K, padding=PAD, stride=1)
    assert out.shape == (N, COUT, H, W), out.shape
    assert jnp.allclose(out, ref, atol=1e-4, rtol=1e-4), "stride=1 mismatch vs reference"

    # stride = 2 (SwiftSRGAN discriminator config): same kernel, wrapper decimates.
    out2 = jax.block_until_ready(
        separable_conv2d(x, dw_weight, dw_bias, pw_weight, pw_bias,
                         kernel_size=K, padding=PAD, stride=2))
    ref2 = _reference(x, dw_weight, dw_bias, pw_weight, pw_bias,
                      kernel_size=K, padding=PAD, stride=2)
    assert out2.shape == ref2.shape, (out2.shape, ref2.shape)
    assert jnp.allclose(out2, ref2, atol=1e-4, rtol=1e-4), "stride=2 mismatch vs reference"

    print("KERNEL_OK")
</pallas_src>

<mosaic_0001>
module attributes {stable_mosaic.version = 11 : i64} {
  func.func @_sepconv_kernel(%arg0: i32, %arg1: memref<1x4x256xf32, #tpu.memory_space<vmem>>, %arg2: memref<2x256xi32, #tpu.memory_space<vmem>>, %arg3: memref<4x9xf32, #tpu.memory_space<vmem>>, %arg4: memref<8x4xf32, #tpu.memory_space<vmem>>, %arg5: memref<8x1xf32, #tpu.memory_space<vmem>>, %arg6: memref<1x8x256xf32, #tpu.memory_space<vmem>>) attributes {dimension_semantics = [#tpu.dimension_semantics<parallel>], iteration_bounds = array<i64: 2>, scalar_prefetch = 0 : i64, scratch_operands = 0 : i64, tpu.core_type = #tpu.core_type<tc>, window_params = [{transform_indices = @transform_0, window_bounds = array<i64: 1, 4, 256>}, {pipeline_mode = #tpu.pipeline_mode<synchronous>, transform_indices = @transform_1, window_bounds = array<i64: 2, 256>}, {pipeline_mode = #tpu.pipeline_mode<synchronous>, transform_indices = @transform_2, window_bounds = array<i64: 4, 9>}, {pipeline_mode = #tpu.pipeline_mode<synchronous>, transform_indices = @transform_3, window_bounds = array<i64: 8, 4>}, {pipeline_mode = #tpu.pipeline_mode<synchronous>, transform_indices = @transform_4, window_bounds = array<i64: 8, 1>}, {transform_indices = @transform_5, window_bounds = array<i64: 1, 8, 256>}]} {
    %c0 = arith.constant 0 : index
    %c0_0 = arith.constant 0 : index
    %c0_1 = arith.constant 0 : index
    %0 = vector.load %arg1[%c0, %c0_0, %c0_1] : memref<1x4x256xf32, #tpu.memory_space<vmem>>, vector<1x4x256xf32>
    %1 = vector.shape_cast %0 : vector<1x4x256xf32> to vector<4x256xf32>
    %c0_2 = arith.constant 0 : index
    %c0_3 = arith.constant 0 : index
    %2 = vector.load %arg3[%c0_2, %c0_3] : memref<4x9xf32, #tpu.memory_space<vmem>>, vector<4x9xf32>
    %c0_4 = arith.constant 0 : index
    %c0_5 = arith.constant 0 : index
    %3 = vector.load %arg2[%c0_4, %c0_5] : memref<2x256xi32, #tpu.memory_space<vmem>>, vector<1x256xi32>
    %4 = vector.shape_cast %3 : vector<1x256xi32> to vector<1x256xi32>
    %5 = vector.broadcast %4 : vector<1x256xi32> to vector<4x256xi32>
    %c1 = arith.constant 1 : index
    %c0_6 = arith.constant 0 : index
    %6 = vector.load %arg2[%c1, %c0_6] : memref<2x256xi32, #tpu.memory_space<vmem>>, vector<1x256xi32>
    %7 = vector.shape_cast %6 : vector<1x256xi32> to vector<1x256xi32>
    %8 = vector.broadcast %7 : vector<1x256xi32> to vector<4x256xi32>
    %c17_i32 = arith.constant 17 : i32
    %9 = tpu.dynamic_rotate %1 by %c17_i32 dim 1 : vector<4x256xf32>, i32 -> vector<4x256xf32>
    %c1_i32 = arith.constant 1 : i32
    %10 = vector.broadcast %c1_i32 : i32 to vector<4x256xi32>
    %11 = arith.cmpi sge, %5, %10 : vector<4x256xi32>
    %c1_i32_7 = arith.constant 1 : i32
    %12 = vector.broadcast %c1_i32_7 : i32 to vector<4x256xi32>
    %13 = arith.cmpi sge, %8, %12 : vector<4x256xi32>
    %14 = arith.andi %11, %13 : vector<4x256xi1>
    %cst = arith.constant 0.000000e+00 : f32
    %15 = vector.broadcast %cst : f32 to vector<4x256xf32>
    %16 = arith.select %14, %9, %15 : vector<4x256xi1>, vector<4x256xf32>
    %17 = vector.extract_strided_slice %2 {offsets = [0, 0], sizes = [4, 1], strides = [1, 1]} : vector<4x9xf32> to vector<4x1xf32>
    %18 = vector.broadcast %17 : vector<4x1xf32> to vector<4x256xf32>
    %19 = arith.mulf %16, %18 : vector<4x256xf32>
    %c16_i32 = arith.constant 16 : i32
    %20 = tpu.dynamic_rotate %1 by %c16_i32 dim 1 : vector<4x256xf32>, i32 -> vector<4x256xf32>
    %c1_i32_8 = arith.constant 1 : i32
    %21 = vector.broadcast %c1_i32_8 : i32 to vector<4x256xi32>
    %22 = arith.cmpi sge, %5, %21 : vector<4x256xi32>
    %cst_9 = arith.constant 0.000000e+00 : f32
    %23 = vector.broadcast %cst_9 : f32 to vector<4x256xf32>
    %24 = arith.select %22, %20, %23 : vector<4x256xi1>, vector<4x256xf32>
    %25 = vector.extract_strided_slice %2 {offsets = [0, 1], sizes = [4, 1], strides = [1, 1]} : vector<4x9xf32> to vector<4x1xf32>
    %26 = vector.broadcast %25 : vector<4x1xf32> to vector<4x256xf32>
    %27 = arith.mulf %24, %26 : vector<4x256xf32>
    %28 = arith.addf %19, %27 : vector<4x256xf32>
    %c15_i32 = arith.constant 15 : i32
    %29 = tpu.dynamic_rotate %1 by %c15_i32 dim 1 : vector<4x256xf32>, i32 -> vector<4x256xf32>
    %c1_i32_10 = arith.constant 1 : i32
    %30 = vector.broadcast %c1_i32_10 : i32 to vector<4x256xi32>
    %31 = arith.cmpi sge, %5, %30 : vector<4x256xi32>
    %c15_i32_11 = arith.constant 15 : i32
    %32 = vector.broadcast %c15_i32_11 : i32 to vector<4x256xi32>
    %33 = arith.cmpi slt, %8, %32 : vector<4x256xi32>
    %34 = arith.andi %31, %33 : vector<4x256xi1>
    %cst_12 = arith.constant 0.000000e+00 : f32
    %35 = vector.broadcast %cst_12 : f32 to vector<4x256xf32>
    %36 = arith.select %34, %29, %35 : vector<4x256xi1>, vector<4x256xf32>
    %37 = vector.extract_strided_slice %2 {offsets = [0, 2], sizes = [4, 1], strides = [1, 1]} : vector<4x9xf32> to vector<4x1xf32>
    %38 = vector.broadcast %37 : vector<4x1xf32> to vector<4x256xf32>
    %39 = arith.mulf %36, %38 : vector<4x256xf32>
    %40 = arith.addf %28, %39 : vector<4x256xf32>
    %c1_i32_13 = arith.constant 1 : i32
    %41 = tpu.dynamic_rotate %1 by %c1_i32_13 dim 1 : vector<4x256xf32>, i32 -> vector<4x256xf32>
    %c1_i32_14 = arith.constant 1 : i32
    %42 = vector.broadcast %c1_i32_14 : i32 to vector<4x256xi32>
    %43 = arith.cmpi sge, %8, %42 : vector<4x256xi32>
    %cst_15 = arith.constant 0.000000e+00 : f32
    %44 = vector.broadcast %cst_15 : f32 to vector<4x256xf32>
    %45 = arith.select %43, %41, %44 : vector<4x256xi1>, vector<4x256xf32>
    %46 = vector.extract_strided_slice %2 {offsets = [0, 3], sizes = [4, 1], strides = [1, 1]} : vector<4x9xf32> to vector<4x1xf32>
    %47 = vector.broadcast %46 : vector<4x1xf32> to vector<4x256xf32>
    %48 = arith.mulf %45, %47 : vector<4x256xf32>
    %49 = arith.addf %40, %48 : vector<4x256xf32>
    %50 = vector.extract_strided_slice %2 {offsets = [0, 4], sizes = [4, 1], strides = [1, 1]} : vector<4x9xf32> to vector<4x1xf32>
    %51 = vector.broadcast %50 : vector<4x1xf32> to vector<4x256xf32>
    %52 = arith.mulf %1, %51 : vector<4x256xf32>
    %53 = arith.addf %49, %52 : vector<4x256xf32>
    %c255_i32 = arith.constant 255 : i32
    %54 = tpu.dynamic_rotate %1 by %c255_i32 dim 1 : vector<4x256xf32>, i32 -> vector<4x256xf32>
    %c15_i32_16 = arith.constant 15 : i32
    %55 = vector.broadcast %c15_i32_16 : i32 to vector<4x256xi32>
    %56 = arith.cmpi slt, %8, %55 : vector<4x256xi32>
    %cst_17 = arith.constant 0.000000e+00 : f32
    %57 = vector.broadcast %cst_17 : f32 to vector<4x256xf32>
    %58 = arith.select %56, %54, %57 : vector<4x256xi1>, vector<4x256xf32>
    %59 = vector.extract_strided_slice %2 {offsets = [0, 5], sizes = [4, 1], strides = [1, 1]} : vector<4x9xf32> to vector<4x1xf32>
    %60 = vector.broadcast %59 : vector<4x1xf32> to vector<4x256xf32>
    %61 = arith.mulf %58, %60 : vector<4x256xf32>
    %62 = arith.addf %53, %61 : vector<4x256xf32>
    %c241_i32 = arith.constant 241 : i32
    %63 = tpu.dynamic_rotate %1 by %c241_i32 dim 1 : vector<4x256xf32>, i32 -> vector<4x256xf32>
    %c15_i32_18 = arith.constant 15 : i32
    %64 = vector.broadcast %c15_i32_18 : i32 to vector<4x256xi32>
    %65 = arith.cmpi slt, %5, %64 : vector<4x256xi32>
    %c1_i32_19 = arith.constant 1 : i32
    %66 = vector.broadcast %c1_i32_19 : i32 to vector<4x256xi32>
    %67 = arith.cmpi sge, %8, %66 : vector<4x256xi32>
    %68 = arith.andi %65, %67 : vector<4x256xi1>
    %cst_20 = arith.constant 0.000000e+00 : f32
    %69 = vector.broadcast %cst_20 : f32 to vector<4x256xf32>
    %70 = arith.select %68, %63, %69 : vector<4x256xi1>, vector<4x256xf32>
    %71 = vector.extract_strided_slice %2 {offsets = [0, 6], sizes = [4, 1], strides = [1, 1]} : vector<4x9xf32> to vector<4x1xf32>
    %72 = vector.broadcast %71 : vector<4x1xf32> to vector<4x256xf32>
    %73 = arith.mulf %70, %72 : vector<4x256xf32>
    %74 = arith.addf %62, %73 : vector<4x256xf32>
    %c240_i32 = arith.constant 240 : i32
    %75 = tpu.dynamic_rotate %1 by %c240_i32 dim 1 : vector<4x256xf32>, i32 -> vector<4x256xf32>
    %c15_i32_21 = arith.constant 15 : i32
    %76 = vector.broadcast %c15_i32_21 : i32 to vector<4x256xi32>
    %77 = arith.cmpi slt, %5, %76 : vector<4x256xi32>
    %cst_22 = arith.constant 0.000000e+00 : f32
    %78 = vector.broadcast %cst_22 : f32 to vector<4x256xf32>
    %79 = arith.select %77, %75, %78 : vector<4x256xi1>, vector<4x256xf32>
    %80 = vector.extract_strided_slice %2 {offsets = [0, 7], sizes = [4, 1], strides = [1, 1]} : vector<4x9xf32> to vector<4x1xf32>
    %81 = vector.broadcast %80 : vector<4x1xf32> to vector<4x256xf32>
    %82 = arith.mulf %79, %81 : vector<4x256xf32>
    %83 = arith.addf %74, %82 : vector<4x256xf32>
    %c239_i32 = arith.constant 239 : i32
    %84 = tpu.dynamic_rotate %1 by %c239_i32 dim 1 : vector<4x256xf32>, i32 -> vector<4x256xf32>
    %c15_i32_23 = arith.constant 15 : i32
    %85 = vector.broadcast %c15_i32_23 : i32 to vector<4x256xi32>
    %86 = arith.cmpi slt, %5, %85 : vector<4x256xi32>
    %c15_i32_24 = arith.constant 15 : i32
    %87 = vector.broadcast %c15_i32_24 : i32 to vector<4x256xi32>
    %88 = arith.cmpi slt, %8, %87 : vector<4x256xi32>
    %89 = arith.andi %86, %88 : vector<4x256xi1>
    %cst_25 = arith.constant 0.000000e+00 : f32
    %90 = vector.broadcast %cst_25 : f32 to vector<4x256xf32>
    %91 = arith.select %89, %84, %90 : vector<4x256xi1>, vector<4x256xf32>
    %92 = vector.extract_strided_slice %2 {offsets = [0, 8], sizes = [4, 1], strides = [1, 1]} : vector<4x9xf32> to vector<4x1xf32>
    %93 = vector.broadcast %92 : vector<4x1xf32> to vector<4x256xf32>
    %94 = arith.mulf %91, %93 : vector<4x256xf32>
    %95 = arith.addf %83, %94 : vector<4x256xf32>
    %c0_26 = arith.constant 0 : index
    %c0_27 = arith.constant 0 : index
    %96 = vector.load %arg4[%c0_26, %c0_27] : memref<8x4xf32, #tpu.memory_space<vmem>>, vector<8x4xf32>
    %cst_28 = arith.constant dense<0.000000e+00> : vector<8x256xf32>
    %97 = tpu.matmul %96, %95, %cst_28 {dimension_numbers = #tpu.dot_dimension_numbers<[1], [0], [0], [1], [0, 0, 1, 1], [], []>} : vector<8x4xf32>, vector<4x256xf32>, vector<8x256xf32> -> vector<8x256xf32>
    %c0_29 = arith.constant 0 : index
    %c0_30 = arith.constant 0 : index
    %98 = vector.load %arg5[%c0_29, %c0_30] : memref<8x1xf32, #tpu.memory_space<vmem>>, vector<8x1xf32>
    %99 = vector.broadcast %98 : vector<8x1xf32> to vector<8x256xf32>
    %100 = arith.addf %97, %99 : vector<8x256xf32>
    %101 = vector.shape_cast %100 : vector<8x256xf32> to vector<1x8x256xf32>
    %c0_31 = arith.constant 0 : index
    %c0_32 = arith.constant 0 : index
    %c0_33 = arith.constant 0 : index
    %102 = vector.load %arg6[%c0_31, %c0_32, %c0_33] : memref<1x8x256xf32, #tpu.memory_space<vmem>>, vector<1x8x256xf32>
    tpu.vector_store %arg6[%c0_31, %c0_32, %c0_33], %101 {strides = array<i32>} : memref<1x8x256xf32, #tpu.memory_space<vmem>>, vector<1x8x256xf32>,
    return
  }
  func.func @transform_0(%arg0: i32) -> (i32, i32, i32) {
    %c0_i32 = arith.constant 0 : i32
    %c0_i32_0 = arith.constant 0 : i32
    %c0_i32_1 = arith.constant 0 : i32
    return %arg0, %c0_i32, %c0_i32_0 : i32, i32, i32
  }
  func.func @transform_1(%arg0: i32) -> (i32, i32) {
    %c0_i32 = arith.constant 0 : i32
    %c0_i32_0 = arith.constant 0 : i32
    %c0_i32_1 = arith.constant 0 : i32
    return %c0_i32, %c0_i32_0 : i32, i32
  }
  func.func @transform_2(%arg0: i32) -> (i32, i32) {
    %c0_i32 = arith.constant 0 : i32
    %c0_i32_0 = arith.constant 0 : i32
    %c0_i32_1 = arith.constant 0 : i32
    return %c0_i32, %c0_i32_0 : i32, i32
  }
  func.func @transform_3(%arg0: i32) -> (i32, i32) {
    %c0_i32 = arith.constant 0 : i32
    %c0_i32_0 = arith.constant 0 : i32
    %c0_i32_1 = arith.constant 0 : i32
    return %c0_i32, %c0_i32_0 : i32, i32
  }
  func.func @transform_4(%arg0: i32) -> (i32, i32) {
    %c0_i32 = arith.constant 0 : i32
    %c0_i32_0 = arith.constant 0 : i32
    %c0_i32_1 = arith.constant 0 : i32
    return %c0_i32, %c0_i32_0 : i32, i32
  }
  func.func @transform_5(%arg0: i32) -> (i32, i32, i32) {
    %c0_i32 = arith.constant 0 : i32
    %c0_i32_0 = arith.constant 0 : i32
    %c0_i32_1 = arith.constant 0 : i32
    return %arg0, %c0_i32, %c0_i32_0 : i32, i32, i32
  }
}

</mosaic_0001>

<bundles_post_ra>
// kernel: tpu_custom_call.1
= control target key start
LH: loop header
LB: loop body
LE: loop exit
PB: predicated region body
PF: predicated region fallthrough
CT: control target
= control target key end

     0   :  { %10 = vsyncpa [#allocation3], 0  ;;  %s1048_s0 = inlined_call_operand.vmem [shape: f32[2,4,256], index: 0, kind: input, shape index: {}]   ;;  %s1049_s1 = inlined_call_operand.vmem [shape: s32[2,256], index: 1, kind: input, shape index: {}]   ;;  %s1050_s2 = inlined_call_operand.vmem [shape: f32[4,9], index: 2, kind: input, shape index: {}]   ;;  %s1051_s3 = inlined_call_operand.vmem [shape: f32[8,4], index: 3, kind: input, shape index: {}]   ;;  %s1052_s4 = inlined_call_operand.vmem [shape: f32[8,1], index: 4, kind: input, shape index: {}]   ;;  %s1053_s5 = inlined_call_operand.hbm [shape: f32[2,8,256], index: 5, kind: output, shape index: {}]  }
   0x1   :  { %12 = vsyncpa [#allocation3 + $0x1], 0  ;;  %s783_s18 = smov 0   ;;  %s785_s19 = smov 0  }
   0x2   :  { %s787_s20 = smov 0   ;;  %s789_s21 = smov 0  }
   0x3 LB: > { %s804_s22 = sadd.s32 4294967295, %s731_s21   ;;  %s582_s23 = sadd.s32 4294967294, %s731_s21   ;;  %s731_s21 = sphi %s789_s21, %s1071_s21   ;;  %s727_s20 = sphi %s787_s20, %s1070_s20   ;;  %s723_s19 = sphi %s785_s19, %s1069_s19   ;;  %s719_s18 = sphi %s783_s18, %s1068_s18  }
   0x4   : > { %s808_s24 = sadd.s32 1, %s731_s21   ;;  %s135_s25 = sadd.s32 1, %s727_s20 }
   0x5   : > { %s132_s26 = ssub.s32 %s731_s21, %s808_s24  ;;  %p145_p0 = scmp.ne.s32.totalorder %s727_s20, %s723_s19 }
   0x6   : > { %p133_p1 = scmp.eq.s32.totalorder %s132_s26, 0  ;;  %p146_p2 = scmp.eq.s32.totalorder %s804_s22, 1 }
   0x7   : > { %p151_p3 = scmp.ne.s32.totalorder %s723_s19, %s719_s18  ;;  %p152_p4 = scmp.eq.s32.totalorder %s582_s23, 1 }
   0x8   : > { %s819_s27 = scalar_select %p133_p1, %s727_s20, %s135_s25  }
   0x9   : > { %p821_p5 = por %p146_p2, %p145_p0  ;;  %p825_p6 = por %p152_p4, %p151_p3 }
   0xa   : > { %p585_p7 = scmp.ge.s32.totalorder %s731_s21, 1  ;;  %p190_p8 = scmp.lt.s32.totalorder %s731_s21, 3 }
   0xc   : > { %p191_p9 = pnand %p585_p7, %p190_p8 }
   0xd   : > { %v224_v0 = vld [vmem:[%s1050_s2] sm:$0xf] (!%p191_p9)  ;;  %v733_v1 = vmov (!%p191_p9), 2   ;;  %v734_v2 = vmov (!%p191_p9), 0   ;;  %p218_p10 = scmp.lt.s32.totalorder (!%p191_p9), %s804_s22, 1  ;;  %v735_v3 = vmov (!%p191_p9), 4   ;;  %v226_v20 = vlaneseq (!%p191_p9) }
   0xe   : > { %194 = sbr.rel (%p191_p9) target bundleno = 434 (0x1b2), region = 40  ;;  %660 = vset.pattern.permute.xlu1 (!%p191_p9), %v733_v1  ;;  %658 = vset.pattern.permute.xlu0 (!%p191_p9), %v734_v2  ;;  %v736_v4 = vmov (!%p191_p9), 1   ;;  %v737_v6 = vmov (!%p191_p9), 3   ;;  %s738_s12 = smov (!%p191_p9), 17   ;;  %v739_v8 = vmov (!%p191_p9), 5   ;;  %v741_v9 = vmov (!%p191_p9), 7  }
   0xf   : > { %302 = vperm.xlu1 (!%p191_p9), %660, %v224_v0   ;;  %266 = vperm.xlu0 (!%p191_p9), %658, %v224_v0   ;;  %s740_s13 = smov (!%p191_p9), 16   ;;  %s742_s14 = smov (!%p191_p9), 15   ;;  %v743_v10 = vmov (!%p191_p9), 6   ;;  %v748_v11 = vmov (!%p191_p9), 8   ;;  %v750_v12 = vmov (!%p191_p9), 0.0   ;;  %v418_v13 = vld [vmem:[%s1052_s4] sm:$0xff] (!%p191_p9) }
  0x10   : > { %s744_s15 = smov (!%p191_p9), 1   ;;  %s745_s16 = smov (!%p191_p9), 127   ;;  %499 = vmatprep.mubr.f32.mxu0 (!%p191_p9), %v750_v12  ;;  %v227_v23 = vshrl.u32 (!%p191_p9), %v226_v20, 7  ;;  %v225_v28 = vld [vmem:[%s1049_s1] ss:$2 sm:$0x3] (!%p191_p9) }
  0x11   : > { %s746_s17 = smov (!%p191_p9), 113   ;;  %s747_s23 = smov (!%p191_p9), 112   ;;  %v589_v29 = vld [vmem:[%s1049_s1 + $0x1] ss:$2 sm:$0x3] (!%p191_p9)  ;;  %v878_v37 = vand.u32 (!%p191_p9), 127, %v226_v20 }
  0x12   : > { %s749_s25 = smov (!%p191_p9), 111   ;;  %v228_v25 = vsub.s32 (!%p191_p9), 0, %v227_v23  ;;  %v232_v26 = vsub.s32 (!%p191_p9), 1, %v227_v23  ;;  %v751_v38 = vmov (!%p191_p9), 839922192   ;;  %s752_s30 = smov (!%p191_p9), [#allocation2]  }
  0x13   : > { %661 = vset.pattern.permute.xlu1 (!%p191_p9), %v735_v3  ;;  %659 = vset.pattern.permute.xlu0 (!%p191_p9), %v736_v4  ;;  %v330_v39 = vunpack.c.l.s4 (!%p191_p9), %v751_v38  ;;  %vm275_vm4 = vcmp.lt.s32.totalorder (!%p191_p9), %v878_v37, 16  ;;  %vm253_vm6 = vcmp.lt.s32.totalorder (!%p191_p9), %v878_v37, 17  ;;  %vm292_vm8 = vcmp.lt.s32.totalorder (!%p191_p9), %v878_v37, 15  ;;  %s673_s6 = sshll.u32 (!%p191_p9), %s752_s30, 4  ;;  %s674_s6 = int_to_ptr.vmem [resolvable:$false] %s673_s6 }
  0x14   : > { %327 = vperm.xlu1 (!%p191_p9), %661, %v224_v0   ;;  %281 = vperm.xlu0 (!%p191_p9), %659, %v224_v0   ;;  %v868_v31 = vrot.slane (!%p191_p9), %v225_v28, %v228_v25  ;;  %v870_v32 = vrot.slane (!%p191_p9), %v589_v29, %v228_v25  ;;  %v874_v34 = vrot.slane (!%p191_p9), %v225_v28, %v232_v26  ;;  %vm313_vm12 = vcmp.lt.s32.totalorder (!%p191_p9), %v878_v37, 1 }
  0x15   : > { %s219_s7 = scalar_select %p218_p10, %s804_s22, 1  ;;  %v876_v35 = vrot.slane %v589_v29, %v232_v26  ;;  %v331_v42 = vunpack.c.0.s8 %v330_v39  ;;  %vm347_vm14 = vcmp.lt.s32.totalorder %v878_v37, 127 }
  0x16   : > { %vm256_vm0 = vcmp.ge.s32.totalorder %v868_v31, 1  ;;  %vm258_vm1 = vcmp.ge.s32.totalorder %v870_v32, 1  ;;  %vm257_vm2 = vcmp.ge.s32.totalorder %v874_v34, 1  ;;  %vm295_vm5 = vcmp.lt.s32.totalorder %v870_v32, 15 }
  0x17   : > { %s598_s8 = sshll.u32 %s219_s7, 3  ;;  %vm259_vm3 = vcmp.ge.s32.totalorder %v876_v35, 1  ;;  %vm893_vm7 = vmand %vm256_vm0, %vm258_vm1  ;;  %vm296_vm9 = vcmp.lt.s32.totalorder %v876_v35, 15  ;;  %v334_v54 = vsub.s32 %v331_v42, %v227_v23  ;;  %vm367_vm15 = vcmp.lt.s32.totalorder %v868_v31, 15  ;;  %s675_s7 = scalar_lea.vmem %s674_s6, 512 }
  0x18   : > { %s222_s11 = scalar_lea.vmem %s1048_s0, %s598_s8  ;;  %662 = vset.pattern.permute.xlu1 %v737_v6  ;;  %663 = vset.pattern.permute.xlu0 %v739_v8  ;;  %vm903_vm10 = vmand %vm257_vm2, %vm259_vm3 }
  0x19   : > { %v839_v5 = vld [vmem:[%s222_s11] sm:$0xff]  ;;  %319 = vperm.xlu1 %662, %v224_v0   ;;  %vm911_vm11 = vmand %vm256_vm0, %vm295_vm5 }
  0x1a   : > { %247 = vrot.lane.b32.xlu0 %v839_v5, %s738_s12  ;;  %v245_v7 = vcombine.high %v839_v5, %v839_v5  ;;  %vm920_vm13 = vmand %vm257_vm2, %vm296_vm9 }
  0x1d   : > { %249 = vrot.lane.b32.xlu1 %v245_v7, %s738_s12  ;;  %s215_s12 = sand.u32 1, %s723_s19  }
  0x1e   : > { %271 = vrot.lane.b32.xlu0 %v839_v5, %s740_s13  ;;  %665 = vset.pattern.permute.xlu1 %v741_v9  ;;  %s509_s26 = scalar_lea.sflag [#allocation3], %s215_s12 }
  0x21   : > { %273 = vrot.lane.b32.xlu1 %v245_v7, %s740_s13  ;;  %s586_s13 = sshll.u32 %s215_s12, 4 }
  0x22   : > { %288 = vrot.lane.b32.xlu0 %v839_v5, %s742_s14 }
  0x25   : > { %290 = vrot.lane.b32.xlu1 %v245_v7, %s742_s14  ;;  %s599_s14 = sshll.u32 %s804_s22, 8 }
  0x26   : > { %353 = vperm.xlu0 %663, %v224_v0  }
  0x29   : > { %309 = vrot.lane.b32.xlu1 %v839_v5, %s744_s15 }
  0x2a   : > { %664 = vset.pattern.permute.xlu0 %v743_v10 }
  0x2b   : > { %374 = vperm.xlu0 %664, %v224_v0  }
  0x2d   : > { %311 = vrot.lane.b32.xlu1 %v245_v7, %s744_s15  ;;  %s217_s15 = scalar_lea.vmem [#allocation2], %s586_s13 }
  0x2f   : > { %345 = vrot.lane.b32.xlu0 %v245_v7, %s745_s16 }
  0x30   : > { %667 = vset.pattern.permute.xlu0 %v734_v2 }
  0x31   : > { %391 = vperm.xlu1 %665, %v224_v0  }
  0x33   : > { %360 = vrot.lane.b32.xlu0 %v839_v5, %s746_s17 }
  0x35   : > { %343 = vrot.lane.b32.xlu1 %v839_v5, %s745_s16  ;;  %s523_s16 = sshll.u32 %s217_s15, 4  ;;  %s1008_s16 = int_to_ptr.vmem [resolvable:$true] %s523_s16 }
  0x36   : > { %666 = vset.pattern.permute.xlu1 %v748_v11  ;;  %s669_s22 = scalar_lea.vmem %s1008_s16, 256  ;;  %p676_p0 = scmp.lt.s32.totalorder %s1008_s16, %s674_s6 }
  0x37   : > { %381 = vrot.lane.b32.xlu0 %v839_v5, %s747_s23  ;;  %p670_p11 = scmp.ne.s32.totalorder %s1008_s16, %s669_s22  ;;  %p677_p1 = scmp.lt.s32.totalorder %s675_s7, %s669_s22 }
  0x39   : > { %410 = vperm.xlu1 %666, %v224_v0   ;;  %p671_p12 = pnand %p670_p11, %p821_p5  ;;  %p678_p2 = por %p677_p1, %p676_p0 }
  0x3b   : > { %398 = vrot.lane.b32.xlu0 %v839_v5, %s749_s25  ;;  %p672_p13 = pneg %p671_p12 }
  0x3d   : > { %362 = vrot.lane.b32.xlu1 %v245_v7, %s746_s17  ;;  %p679_p3 = pnand %p678_p2, %p672_p13 }
  0x3f   : > { %421 = vperm.xlu0 %667, %v418_v13  }
  0x41   : > { %383 = vrot.lane.b32.xlu1 %v245_v7, %s747_s23 }
  0x45   : > { %400 = vrot.lane.b32.xlu1 %v245_v7, %s749_s25  ;;  %s1006_s25 = scalar_lea.hbm %s1053_s5, %s599_s14 }
  0x8e   : > { %v854_v14 = vpop.permute.xlu1 %302  ;;  %v856_v15 = vpop.permute.xlu0 %266 }
  0x93   : > { %v858_v16 = vpop.permute.xlu1 %327  ;;  %v282_v17 = vpop.permute.xlu0 %281 }
  0x94   : > { %v335_v3 = vrot.slane %v858_v16, %v334_v54 }
  0x97   : > { %v248_v18 = vpop.permute.xlu0 %247 }
  0x98   : > { %v860_v19 = vpop.permute.xlu1 %319 }
  0x9b   : > { %v272_v21 = vpop.permute.xlu0 %271 }
  0x9c   : > { %v250_v22 = vpop.permute.xlu1 %249 }
  0x9d   : > { %v254_v48 = vsel %vm253_vm6, %v248_v18, %v250_v22  ;;  %v255_v49 = vsel %vm253_vm6, %v250_v22, %v248_v18 }
  0x9e   : > { %v262_v60 = vsel %vm893_vm7, %v255_v49, 0.0  ;;  %v263_v61 = vsel %vm903_vm10, %v254_v48, 0.0  ;;  %vm405_vm7 = vmand %vm367_vm15, %vm295_vm5 }
  0x9f   : > { %v289_v27 = vpop.permute.xlu0 %288  ;;  %v269_v7 = vmul.f32 %v856_v15, %v262_v60  ;;  %v270_v8 = vmul.f32 %v856_v15, %v263_v61  ;;  %v337_v15 = vmul.f32 %v335_v3, %v839_v5 }
  0xa0   : > { %v274_v24 = vpop.permute.xlu1 %273 }
  0xa1   : > { %v276_v45 = vsel %vm275_vm4, %v272_v21, %v274_v24  ;;  %v277_v46 = vsel %vm275_vm4, %v274_v24, %v272_v21  ;;  %vm958_vm4 = vmand %vm367_vm15, %vm258_vm1 }
  0xa2   : > { %v278_v55 = vsel %vm256_vm0, %v277_v46, 0.0  ;;  %v279_v56 = vsel %vm257_vm2, %v276_v45, 0.0  ;;  %vm368_vm0 = vcmp.lt.s32.totalorder %v874_v34, 15  ;;  %vm364_vm2 = vcmp.lt.s32.totalorder %v878_v37, 113  ;;  %v417_v34 = vld [vmem:[%s1051_s3] sm:$0xff] }
  0xa3   : > { %v284_v0 = vmul.f32 %v282_v17, %v278_v55  ;;  %v285_v1 = vmul.f32 %v282_v17, %v279_v56  ;;  %vm966_vm6 = vmand %vm368_vm0, %vm259_vm3 }
  0xa4   : > { %v291_v30 = vpop.permute.xlu1 %290 }
  0xa5   : > { %v872_v33 = vpop.permute.xlu0 %353  ;;  %v293_v51 = vsel %vm292_vm8, %v289_v27, %v291_v30  ;;  %v294_v52 = vsel %vm292_vm8, %v291_v30, %v289_v27  ;;  %v286_v12 = vadd.f32 %v284_v0, %v269_v7  ;;  %v287_v13 = vadd.f32 %v285_v1, %v270_v8  ;;  %vm406_vm8 = vmand %vm368_vm0, %vm296_vm9 }
  0xa6   : > { %v299_v62 = vsel %vm911_vm11, %v294_v52, 0.0  ;;  %v300_v63 = vsel %vm920_vm13, %v293_v51, 0.0 }
  0xa7   : > { %v305_v9 = vmul.f32 %v854_v14, %v299_v62  ;;  %v306_v10 = vmul.f32 %v854_v14, %v300_v63 }
  0xa8   : > { %v310_v36 = vpop.permute.xlu1 %309 }
  0xa9   : > { %v307_v22 = vadd.f32 %v305_v9, %v286_v12  ;;  %v308_v23 = vadd.f32 %v306_v10, %v287_v13 }
  0xaa   : > { %v886_v41 = vpop.permute.xlu0 %374 }
  0xac   : > { %v312_v40 = vpop.permute.xlu1 %311 }
  0xad   : > { %v314_v57 = vsel %vm313_vm12, %v310_v36, %v312_v40  ;;  %v315_v58 = vsel %vm313_vm12, %v312_v40, %v310_v36  ;;  %v339_v36 = vcombine.high %v337_v15, %v337_v15 }
  0xae   : > { %v346_v59 = vpop.permute.xlu0 %345  ;;  %v316_v4 = vsel %vm258_vm1, %v315_v58, 0.0  ;;  %v317_v6 = vsel %vm259_vm3, %v314_v57, 0.0  ;;  %vm385_vm1 = vcmp.lt.s32.totalorder %v878_v37, 112  ;;  %vm402_vm3 = vcmp.lt.s32.totalorder %v878_v37, 111 }
  0xaf   : > { %v322_v16 = vmul.f32 %v860_v19, %v316_v4  ;;  %v323_v17 = vmul.f32 %v860_v19, %v317_v6 }
  0xb0   : > { %v924_v53 = vpop.permute.xlu1 %391 }
  0xb1   : > { %v324_v5 = vadd.f32 %v322_v16, %v307_v22  ;;  %v325_v24 = vadd.f32 %v323_v17, %v308_v23 }
  0xb2   : > { %v361_v11 = vpop.permute.xlu0 %360 }
  0xb3   : > { %v341_v43 = vadd.f32 %v337_v15, %v324_v5  ;;  %v342_v44 = vadd.f32 %v339_v36, %v325_v24 }
  0xb4   : > { %v344_v2 = vpop.permute.xlu1 %343 }
  0xb5   : > { %v348_v20 = vsel %vm347_vm14, %v344_v2, %v346_v59  ;;  %v349_v21 = vsel %vm347_vm14, %v346_v59, %v344_v2 }
  0xb6   : > { %v350_v25 = vsel %vm295_vm5, %v348_v20, 0.0  ;;  %v351_v26 = vsel %vm296_vm9, %v349_v21, 0.0  ;;  %v382_v28 = vpop.permute.xlu0 %381  ;;  %vm428_vm5 = vcmask 1043456   ;;  %vm424_vm9 = vcmask 31744  }
  0xb7   : > { %v356_v40 = vmul.f32 %v872_v33, %v350_v25  ;;  %v357_v42 = vmul.f32 %v872_v33, %v351_v26 }
  0xb8   : > { %v411_v18 = vpop.permute.xlu1 %410 }
  0xb9   : > { %v358_v33 = vadd.f32 %v356_v40, %v341_v43  ;;  %v359_v54 = vadd.f32 %v357_v42, %v342_v44 }
  0xba   : > { %v399_v52 = vpop.permute.xlu0 %398 }
  0xbc   : > { %v363_v27 = vpop.permute.xlu1 %362 }
  0xbd   : > { %v365_v29 = vsel %vm364_vm2, %v361_v11, %v363_v27  ;;  %v366_v30 = vsel %vm364_vm2, %v363_v27, %v361_v11 }
  0xbe   : > { %v371_v38 = vsel %vm958_vm4, %v365_v29, 0.0  ;;  %v372_v39 = vsel %vm966_vm6, %v366_v30, 0.0  ;;  %v422_v35 = vpop.permute.xlu0 %421 }
  0xbf   : > { %v377_v46 = vmul.f32 %v886_v41, %v371_v38  ;;  %v378_v47 = vmul.f32 %v886_v41, %v372_v39 }
  0xc0   : > { %v384_v45 = vpop.permute.xlu1 %383 }
  0xc1   : > { %v386_v48 = vsel %vm385_vm1, %v382_v28, %v384_v45  ;;  %v387_v49 = vsel %vm385_vm1, %v384_v45, %v382_v28  ;;  %v379_v57 = vadd.f32 %v377_v46, %v358_v33  ;;  %v380_v32 = vadd.f32 %v378_v47, %v359_v54 }
  0xc2   : > { %v388_v50 = vsel %vm367_vm15, %v386_v48, 0.0  ;;  %v389_v51 = vsel %vm368_vm0, %v387_v49, 0.0 }
  0xc3   : > { %v394_v41 = vmul.f32 %v924_v53, %v388_v50  ;;  %v395_v55 = vmul.f32 %v924_v53, %v389_v51 }
  0xc4   : > { %v401_v56 = vpop.permute.xlu1 %400 }
  0xc5   : > { %v403_v58 = vsel %vm402_vm3, %v399_v52, %v401_v56  ;;  %v404_v37 = vsel %vm402_vm3, %v401_v56, %v399_v52  ;;  %v396_v60 = vadd.f32 %v394_v41, %v379_v57  ;;  %v397_v62 = vadd.f32 %v395_v55, %v380_v32 }
  0xc6   : > { %v407_v59 = vsel %vm405_vm7, %v403_v58, 0.0  ;;  %v408_v31 = vsel %vm406_vm8, %v404_v37, 0.0 }
  0xc7   : > { %v413_v61 = vmul.f32 %v411_v18, %v407_v59  ;;  %v414_v63 = vmul.f32 %v411_v18, %v408_v31 }
  0xc9   : > { %v416_v53 = vadd.f32 %v414_v63, %v397_v62  ;;  %v415_v0 = vadd.f32 %v413_v61, %v396_v60 }
  0xcb   : > { %590 = vmatprep.subr.msk.mxu0 %vm428_vm5, %v416_v53 }
  0xcc   : > { %591 = vmatpush1.msk.msra.mxu0 %vm428_vm5, %v415_v0 }
  0xcd   : > { %592 = vmatmul.mubr.msk.f32.vlgmr.msra.gmra.mrb[0].mxu0 %vm424_vm9, %v417_v34 }
 0x1a0   : > { %v501_v1 = vpop.f32.mrb[0].mxu0 }
 0x1a1   : > { %v502_v2 = vadd.f32 %v501_v1, %v422_v35  ;;  %v503_v3 = vpop.f32.mrb[1].mxu0 }
 0x1a2   : > { %v504_v4 = vadd.f32 %v503_v3, %v422_v35 }
 0x1a3   : > { %506 = vst [vmem:[%s217_s15] sm:$0xff] %v502_v2 }
 0x1a4   : > { %507 = vst [vmem:[%s217_s15 + $0x8] sm:$0xff] %v504_v4 }
 0x1a5   : > { %682 = shalt.err (!%p679_p3)
}
 0x1a6   : > { %s683_s8 = scalar_lea.hbm %s1006_s25, 256  ;;  %s687_s11 = scalar_lea.hbm %s1053_s5, 512 }
 0x1a7   : > { %p684_p4 = scmp.ne.s32.totalorder %s1006_s25, %s683_s8  ;;  %p688_p9 = scmp.lt.u32.totalorder %s1006_s25, %s1053_s5 }
 0x1a8   : > { %p689_p10 = scmp.lt.u32.totalorder %s687_s11, %s683_s8  ;;  %p691_p12 = scmp.lt.u32.totalorder %s683_s8, %s1006_s25 }
 0x1a9   : > { %p685_p7 = pnand %p684_p4, %p821_p5 }
 0x1aa   : > { %p690_p11 = por %p689_p10, %p688_p9 }
 0x1ab   : > { %p686_p8 = pneg %p685_p7 }
 0x1ac   : > { %p692_p13 = por %p691_p12, %p690_p11 }
 0x1ae   : > { %p693_p0 = pnand %p692_p13, %p686_p8 }
 0x1b0   : > { %696 = shalt.err (!%p693_p0)
}
 0x1b1   : > { %600 = dma.vmem_to_hbm [thread:$0]  (%p821_p5), %s1008_s16, 256, %s1006_s25, %s509_s26  }
 0x1b2 PF: > { %p606_p1 = scmp.ge.s32.totalorder %s731_s21, 2  ;;  %s535_s14 = sand.u32 1, %s719_s18  }
 0x1b3   : > { %s536_s15 = scalar_lea.sflag [#allocation3], %s535_s14 }
 0x1b4   : > { %p603_p2 = pnand %p606_p1, %p825_p6 }
 0x1b6   : > { %714 = dma.done.wait (!%p603_p2), %s536_s15, 256  }
 0x1b7   : > { %716 = vsyncadd (!%p603_p2), %s536_s15, 4294967040  ;;  %p15_p3 = scmp.ge.s32.totalorder %s808_s24, 4   ;;  %s1068_s18 = smov %s723_s19 }
 0x1b8   : > { %s1069_s19 = smov %s727_s20  ;;  %s1070_s20 = smov %s819_s27 }
 0x1b9   : > { %s1071_s21 = smov %s808_s24  ;;  %17 = sbr.rel (!%p15_p3) target bundleno = 3 (0x3), region = 76 }
 0x1c0   :  { %541 = vsyncpa [#allocation3], 1 }
 0x1c1   :  { %543 = vsyncpa [#allocation3 + $0x1], 1 }

</bundles_post_ra>
